<compile_context>
chip_gen: v6e
topology: v6e:2x2x1
jax: 0.10.0
libtpu: 0.0.40
codegen_flags: <defaults>
</compile_context>

<pallas_src>
import functools

import numpy as np
import jax
import jax.numpy as jnp
from jax.experimental import pallas as pl
from jax.experimental.pallas import tpu as pltpu


# ----------------------------------------------------------------------------- kernel

def _fused_kernel(x_ref, w_ref, b_ref, o_ref):
    # x_ref: [tb, total_in]   w_ref: [total_in, E*D]   b_ref: [1, E*D]   o_ref: [tb, E*D]
    acc = jnp.dot(x_ref[...], w_ref[...], preferred_element_type=jnp.float32)
    o_ref[...] = jnp.tanh(acc + b_ref[...]).astype(o_ref.dtype)


# --------------------------------------------------------------------- weight packing

def pack_weights(params, split_shape, d_model, dtype=jnp.float32):
    """Build the block-structured packed weight / bias (done once per params)."""
    n = len(split_shape)
    assert split_shape[-1][0] == 1, "last (self) group must have K == 1"
    L_last = split_shape[-1][1]
    total_in = sum(k * l for k, l in split_shape)
    E = sum(k for k, _ in split_shape[:-1]) + 1
    self_start = total_in - L_last

    W_hat = np.zeros((total_in, E * d_model), dtype=np.float32)
    b_hat = np.zeros((1, E * d_model), dtype=np.float32)

    e, row = 0, 0
    for i, (k, l) in enumerate(split_shape[:-1]):
        W = np.asarray(params[f"W{i}"], dtype=np.float32)          # [l + L_last, D] (torch W.T)
        Wa, Wb = W[:l, :], W[l:, :]
        b = np.asarray(params[f"b{i}"], dtype=np.float32)
        for j in range(k):
            c0 = e * d_model
            W_hat[row + j * l: row + (j + 1) * l, c0:c0 + d_model] = Wa
            W_hat[self_start:self_start + L_last, c0:c0 + d_model] = Wb
            b_hat[0, c0:c0 + d_model] = b
            e += 1
        row += k * l

    W_last = np.asarray(params[f"W{n - 1}"], dtype=np.float32)     # [L_last, D]
    c0 = e * d_model
    W_hat[self_start:self_start + L_last, c0:c0 + d_model] = W_last
    b_hat[0, c0:c0 + d_model] = np.asarray(params[f"b{n - 1}"], dtype=np.float32)

    return jnp.asarray(W_hat, dtype=dtype), jnp.asarray(b_hat, dtype=dtype)


# --------------------------------------------------------------------------- forward

@functools.partial(jax.jit, static_argnums=(3, 4))
def self_embedding_forward(x, w_hat, b_hat, split_shape, d_model):
    """Pallas implementation of SelfEmbedding.forward(x, self_idx=-1)."""
    B, total_in = x.shape
    L_last = split_shape[-1][1]
    E = sum(k for k, _ in split_shape[:-1]) + 1
    out_cols = E * d_model
    dtype = x.dtype
    itemsize = jnp.dtype(dtype).itemsize

    # ---- batch tile sizing (keeps VMEM residency bounded; v7x has only 64 MiB/TC) ----
    bytes_per_row = (total_in + out_cols) * itemsize
    try:
        vmem_cap = pltpu.get_tpu_info().vmem_capacity_bytes
    except Exception:  # pragma: no cover - conservative fallback
        vmem_cap = 64 * 1024 * 1024
    act_budget = min(vmem_cap // 8, 12 * 1024 * 1024)              # double-buffered activations
    max_rows = max(8, act_budget // (2 * bytes_per_row))
    if B <= max_rows:
        block_b = B                                                  # full dim: always legal
    else:
        block_b = max(8, (int(max_rows) // 8) * 8)
    grid = (pl.cdiv(B, block_b),)

    cost = pl.CostEstimate(
        flops=2 * B * total_in * out_cols,
        transcendentals=B * out_cols,
        bytes_accessed=(B * total_in + total_in * out_cols + out_cols + B * out_cols)
        * itemsize,
    )

    out_flat = pl.pallas_call(
        _fused_kernel,
        out_shape=jax.ShapeDtypeStruct((B, out_cols), dtype),
        grid_spec=pltpu.PrefetchScalarGridSpec(
            num_scalar_prefetch=0,
            grid=grid,
            in_specs=[
                pl.BlockSpec((block_b, total_in), lambda i: (i, 0)),   # x row tile
                pl.BlockSpec((total_in, out_cols), lambda i: (0, 0)),  # packed W (resident)
                pl.BlockSpec((1, out_cols), lambda i: (0, 0)),         # packed bias (resident)
            ],
            out_specs=pl.BlockSpec((block_b, out_cols), lambda i: (i, 0)),
        ),
        compiler_params=pltpu.CompilerParams(
            dimension_semantics=("parallel",),
            vmem_limit_bytes=32 * 1024 * 1024,
        ),
        cost_estimate=cost,
    )(x, w_hat, b_hat)

    # Free, contiguous reshape to [B, E, D]; self_x is the trailing slice of x.
    self_x = x[:, total_in - L_last:]
    return out_flat.reshape(B, E, d_model), self_x


# ------------------------------------------------------------------- init & reference

def init_params(key, split_shape, d_model, dtype=jnp.float32):
    """Orthogonal(gain=sqrt(2)) weights, zero bias (as in the torch init_)."""
    params = {}
    orth = jax.nn.initializers.orthogonal(scale=float(np.sqrt(2.0)))
    n = len(split_shape)
    L_last = split_shape[-1][1]
    keys = jax.random.split(key, n)
    for i, (_, l) in enumerate(split_shape):
        in_dim = l if i == n - 1 else l + L_last
        # stored as [in_dim, d_model] (i.e. torch W.T) so forward is x @ W
        params[f"W{i}"] = orth(keys[i], (in_dim, d_model), dtype)
        params[f"b{i}"] = jnp.zeros((d_model,), dtype)
    return params


def _split_obs(x, split_shape):
    out, start = [], 0
    for k, l in split_shape:
        out.append(x[:, start:start + k * l])
        start += k * l
    return out


def reference_forward(x, params, split_shape, d_model):
    """Pure-JAX reference matching the torch semantics exactly (concat -> matmul)."""
    splits = _split_obs(x, split_shape)
    n = len(split_shape)
    self_x = splits[-1]
    x1 = []
    for i, (k, l) in enumerate(split_shape[:-1]):
        W = params[f"W{i}"]
        b = params[f"b{i}"]
        for j in range(k):
            chunk = splits[i][:, l * j:l * j + l]
            temp = jnp.concatenate([chunk, self_x], axis=-1)
            x1.append(jnp.tanh(temp @ W + b))
    W = params[f"W{n - 1}"]
    b = params[f"b{n - 1}"]
    x1.append(jnp.tanh(self_x @ W + b))
    return jnp.stack(x1, axis=1), self_x


# ------------------------------------------------------------------------------- main

if __name__ == "__main__":
    # small, forward-consistent shapes; last group is the "self" features
    split_shape = ((3, 10), (2, 6), (1, 8))
    d_model = 32
    B = 8                                               # >= 8 to fill f32 sublanes
    total_dim = sum(k * l for k, l in split_shape)      # 30 + 12 + 8 = 50
    E = sum(k for k, _ in split_shape[:-1]) + 1         # 6 entities

    key = jax.random.PRNGKey(0)
    k_x, k_p = jax.random.split(key)
    x = jax.random.normal(k_x, (B, total_dim), dtype=jnp.float32)
    params = init_params(k_p, split_shape, d_model)

    w_hat, b_hat = pack_weights(params, split_shape, d_model)       # once per params

    out, self_x = self_embedding_forward(x, w_hat, b_hat, split_shape, d_model)
    out = jax.block_until_ready(out)
    self_x = jax.block_until_ready(self_x)

    ref_out, ref_self = reference_forward(x, params, split_shape, d_model)

    assert out.shape == (B, E, d_model)
    assert self_x.shape == (B, split_shape[-1][1])
    np.testing.assert_allclose(np.asarray(out), np.asarray(ref_out),
                               rtol=1e-5, atol=1e-5)
    np.testing.assert_allclose(np.asarray(self_x), np.asarray(ref_self),
                               rtol=1e-6, atol=1e-6)
    print("KERNEL_OK")
</pallas_src>

<mosaic_0001>
module attributes {stable_mosaic.version = 11 : i64} {
  func.func @_fused_kernel(%arg0: i32, %arg1: memref<8x50xf32, #tpu.memory_space<vmem>>, %arg2: memref<50x192xf32, #tpu.memory_space<vmem>>, %arg3: memref<1x192xf32, #tpu.memory_space<vmem>>, %arg4: memref<8x192xf32, #tpu.memory_space<vmem>>) attributes {dimension_semantics = [#tpu.dimension_semantics<parallel>], iteration_bounds = array<i64: 1>, scalar_prefetch = 0 : i64, scratch_operands = 0 : i64, tpu.core_type = #tpu.core_type<tc>, window_params = [{transform_indices = @transform_0, window_bounds = array<i64: 8, 50>}, {pipeline_mode = #tpu.pipeline_mode<synchronous>, transform_indices = @transform_1, window_bounds = array<i64: 50, 192>}, {pipeline_mode = #tpu.pipeline_mode<synchronous>, transform_indices = @transform_2, window_bounds = array<i64: 1, 192>}, {transform_indices = @transform_3, window_bounds = array<i64: 8, 192>}]} {
    %c0 = arith.constant 0 : index
    %c0_0 = arith.constant 0 : index
    %0 = vector.load %arg1[%c0, %c0_0] : memref<8x50xf32, #tpu.memory_space<vmem>>, vector<8x50xf32>
    %c0_1 = arith.constant 0 : index
    %c0_2 = arith.constant 0 : index
    %1 = vector.load %arg2[%c0_1, %c0_2] : memref<50x192xf32, #tpu.memory_space<vmem>>, vector<50x192xf32>
    %cst = arith.constant dense<0.000000e+00> : vector<8x192xf32>
    %2 = tpu.matmul %0, %1, %cst {dimension_numbers = #tpu.dot_dimension_numbers<[1], [0], [0], [1], [0, 0, 1, 1], [], []>} : vector<8x50xf32>, vector<50x192xf32>, vector<8x192xf32> -> vector<8x192xf32>
    %c0_3 = arith.constant 0 : index
    %c0_4 = arith.constant 0 : index
    %3 = vector.load %arg3[%c0_3, %c0_4] : memref<1x192xf32, #tpu.memory_space<vmem>>, vector<1x192xf32>
    %4 = vector.broadcast %3 : vector<1x192xf32> to vector<8x192xf32>
    %5 = arith.addf %2, %4 : vector<8x192xf32>
    %6 = math.tanh %5 : vector<8x192xf32>
    %c0_5 = arith.constant 0 : index
    %c0_6 = arith.constant 0 : index
    %7 = vector.load %arg4[%c0_5, %c0_6] : memref<8x192xf32, #tpu.memory_space<vmem>>, vector<8x192xf32>
    tpu.vector_store %arg4[%c0_5, %c0_6], %6 {strides = array<i32>} : memref<8x192xf32, #tpu.memory_space<vmem>>, vector<8x192xf32>,
    return
  }
  func.func @transform_0(%arg0: i32) -> (i32, i32) {
    %c0_i32 = arith.constant 0 : i32
    %c0_i32_0 = arith.constant 0 : i32
    return %arg0, %c0_i32 : i32, i32
  }
  func.func @transform_1(%arg0: i32) -> (i32, i32) {
    %c0_i32 = arith.constant 0 : i32
    %c0_i32_0 = arith.constant 0 : i32
    %c0_i32_1 = arith.constant 0 : i32
    return %c0_i32, %c0_i32_0 : i32, i32
  }
  func.func @transform_2(%arg0: i32) -> (i32, i32) {
    %c0_i32 = arith.constant 0 : i32
    %c0_i32_0 = arith.constant 0 : i32
    %c0_i32_1 = arith.constant 0 : i32
    return %c0_i32, %c0_i32_0 : i32, i32
  }
  func.func @transform_3(%arg0: i32) -> (i32, i32) {
    %c0_i32 = arith.constant 0 : i32
    %c0_i32_0 = arith.constant 0 : i32
    return %arg0, %c0_i32 : i32, i32
  }
}

</mosaic_0001>

<bundles_post_ra>
// kernel: self_embedding_forward.1
= control target key start
LH: loop header
LB: loop body
LE: loop exit
PB: predicated region body
PF: predicated region fallthrough
CT: control target
= control target key end

     0   :  { %8 = vsyncpa [#allocation3], 0  ;;  %s256_s0 = inlined_call_operand.hbm [shape: f32[8,50], index: 0, kind: input, shape index: {}]   ;;  %s257_s1 = inlined_call_operand.hbm [shape: f32[50,192], index: 1, kind: input, shape index: {}]   ;;  %s258_s2 = inlined_call_operand.vmem [shape: f32[1,192], index: 2, kind: input, shape index: {}]   ;;  %s259_s3 = inlined_call_operand.vmem [shape: f32[8,192], index: 3, kind: output, shape index: {}]  }
   0x1   :  { %9 = vsyncpa [#allocation5], 0  ;;  %s216_s12 = smov [#allocation2]   ;;  %s217_s14 = smov [#allocation4]  }
   0x2   :  { %s16_s13 = sshll.u32 %s216_s12, 4  ;;  %s25_s15 = sshll.u32 %s217_s14, 4  ;;  %s17_s13 = int_to_ptr.vmem [resolvable:$true] %s16_s13  ;;  %s26_s15 = int_to_ptr.vmem [resolvable:$true] %s25_s15 }
   0x3   :  { %s180_s16 = scalar_lea.vmem %s17_s13, 128  ;;  %p185_p1 = scmp.lt.s32.totalorder %s17_s13, %s17_s13 }
   0x4   :  { %p181_p0 = scmp.ne.s32.totalorder %s17_s13, %s180_s16  ;;  %p186_p2 = scmp.lt.s32.totalorder %s180_s16, %s180_s16 }
   0x6   :  { %p187_p3 = por %p186_p2, %p185_p1 }
   0x8   :  { %p188_p4 = pnand %p187_p3, %p181_p0 }
   0xa   :  { %191 = shalt.err (!%p188_p4)
}
   0xb   :  { %19 = dma.hbm_to_vmem [thread:$0]  %s256_s0, 128, %s17_s13, [#allocation3]  }
   0xc   :  { %s200_s19 = scalar_lea.vmem %s26_s15, 1792  ;;  %p205_p6 = scmp.lt.s32.totalorder %s26_s15, %s26_s15 }
   0xd   :  { %p201_p5 = scmp.ne.s32.totalorder %s26_s15, %s200_s19  ;;  %p206_p7 = scmp.lt.s32.totalorder %s200_s19, %s200_s19 }
   0xf   :  { %p207_p8 = por %p206_p7, %p205_p6 }
  0x11   :  { %p208_p9 = pnand %p207_p8, %p201_p5 }
  0x13   :  { %211 = shalt.err (!%p208_p9)
}
  0x14   :  { %s218_s20 = smov 256   ;;  %s219_s21 = smov 16  }
  0x15   :  { %31 = dma.hbm_to_vmem [thread:$0]  %s257_s1, 1792, %s26_s15, [#allocation5], %s218_s20, %s218_s20, %s219_s21  }
  0x16   :  { %212 = dma.done.wait [#allocation3], 128  }
  0x17   :  { %213 = vsyncadd [#allocation3], 4294967168 }
  0x18   :  { %214 = dma.done.wait [#allocation5], 1792  }
  0x19   :  { %215 = vsyncadd [#allocation5], 4294965504  ;;  %v220_v0 = vmov 0.0   ;;  %vm71_vm0 = vcmask 1041408   ;;  %v54_v1 = vld [vmem:[#allocation4 + $0x68] sm:$0x3]  ;;  %v57_v16 = vlaneseq }
  0x1a   :  { %142 = vmatprep.mubr.f32.mxu0 %v220_v0  ;;  %v53_v2 = vld [vmem:[#allocation4 + $0x60] sm:$0x3]  ;;  %v52_v3 = vld [vmem:[#allocation4 + $0x58] sm:$0xff]  ;;  %160 = vmatprep.subr.msk.mxu0 %vm71_vm0, %v54_v1  ;;  %v51_v4 = vld [vmem:[#allocation4 + $0x50] sm:$0xff]  ;;  %vm67_vm1 = vcmask 408576   ;;  %vm152_vm2 = vcmask 523264  }
  0x1b   :  { %161 = vmatpush1.msk.msra.mxu0 %vm71_vm0, %v53_v2  ;;  %v50_v5 = vld [vmem:[#allocation4 + $0x48] sm:$0xff]  ;;  %v49_v6 = vld [vmem:[#allocation4 + $0x40] sm:$0xff]  ;;  %v48_v7 = vld [vmem:[#allocation4 + $0x38] sm:$0xff]  ;;  %v58_v17 = vshrl.u32 %v57_v16, 7 }
  0x1c   :  { %98 = vmatprep.subr.mxu0 %v52_v3  ;;  %v47_v8 = vld [vmem:[#allocation4 + $0x30] sm:$0xff]  ;;  %v46_v9 = vld [vmem:[#allocation4 + $0x28] sm:$0xff]  ;;  %v45_v10 = vld [vmem:[#allocation4 + $0x20] sm:$0xff] }
  0x1d   :  { %99 = vmatpush1.msra.mxu0 %v51_v4  ;;  %v44_v11 = vld [vmem:[#allocation4 + $0x18] sm:$0xff]  ;;  %v43_v12 = vld [vmem:[#allocation4 + $0x10] sm:$0xff]  ;;  %v42_v13 = vld [vmem:[#allocation4 + $0x8] sm:$0xff]  ;;  %v59_v18 = vsub.s32 0, %v58_v17  ;;  %v63_v20 = vsub.s32 1, %v58_v17 }
  0x1e   :  { %100 = vmatprep.subr.mxu0 %v50_v5  ;;  %v41_v14 = vld [vmem:[#allocation4] sm:$0xff]  ;;  %v40_v15 = vld [vmem:[#allocation2] sm:$0xff] }
  0x1f   :  { %101 = vmatpush1.msra.mxu0 %v49_v6  ;;  %v55_v19 = vld [vmem:[%s258_s2] sm:$0x3] }
  0x20   :  { %102 = vmatprep.subr.mxu0 %v48_v7  ;;  %v60_v21 = vrot.slane %v55_v19, %v59_v18  ;;  %v64_v22 = vrot.slane %v55_v19, %v63_v20 }
  0x21   :  { %103 = vmatpush1.msra.mxu0 %v47_v8 }
  0x22   :  { %104 = vmatprep.subr.mxu0 %v46_v9 }
  0x23   :  { %105 = vmatpush1.msra.mxu0 %v45_v10 }
  0x24   :  { %106 = vmatprep.subr.mxu0 %v44_v11 }
  0x25   :  { %107 = vmatpush1.msra.mxu0 %v43_v12 }
  0x26   :  { %108 = vmatprep.subr.mxu0 %v42_v13 }
  0x27   :  { %109 = vmatpush1.msra.mxu0 %v41_v14 }
  0x28   :  { %162 = vmatmul.mubr.msk.f32.vlgmr.msra.gmra.mxu0 %vm67_vm1, %v40_v15 }
  0xe8   :  { %v144_v23 = vpop.f32.mrf.mxu0 }
  0xe9   :  { %v145_v24 = vadd.f32 %v144_v23, %v60_v21 }
  0xea   :  { %v146_v25 = vpop.f32.mrf.mxu0 }
  0xeb   :  { %168 = vtanh.f32 %v145_v24  ;;  %v147_v26 = vadd.f32 %v146_v25, %v64_v22 }
  0xed   :  { %170 = vtanh.f32 %v147_v26 }
  0xf8   :  { %v169_v27 = vpop.eup %168 }
  0xf9   :  { %151 = vst [vmem:[%s259_s3] sm:$0xff] %v169_v27 }
  0xfa   :  { %v171_v28 = vpop.eup %170 }
  0xfb   :  { %153 = vst.msk [vmem:[%s259_s3 + $0x8] sm:$0xff] %vm152_vm2, %v171_v28 }
  0xfc   :  { %158 = vsyncpa [#allocation3], 1 }
  0xfd   :  { %159 = vsyncpa [#allocation5], 1 }

</bundles_post_ra>
